<compile_context>
chip_gen: v7x
topology: tpu7x:2x2x1
jax: 0.10.0
libtpu: 0.0.40
codegen_flags: <defaults>
</compile_context>

<pallas_src>
import functools

import jax
import jax.numpy as jnp
from jax.experimental import pallas as pl
from jax.experimental.pallas import tpu as pltpu

LN_EPS = 1e-5  # torch.nn.LayerNorm default


def _round_up(x: int, m: int) -> int:
    return (x + m - 1) // m * m


def _pad_to(arr, target_shape):
    pads = [(0, t - s) for s, t in zip(arr.shape, target_shape)]
    if any(p[1] for p in pads):
        arr = jnp.pad(arr, pads)
    return arr


def _vmem_budget():
    """Physical VMEM bytes (per core) and a usable budget with headroom."""
    phys = 64 * 1024 * 1024  # conservative fallback (v7x per-TC)
    try:
        info = pltpu.get_tpu_info()
        phys = int(getattr(info, "vmem_capacity_bytes", phys)) or phys
    except Exception:
        pass
    budget = (phys * 3) // 4  # leave headroom for Mosaic internal scratch
    return phys, budget


def _spec(shape, index_map, single_buffer=False):
    """BlockSpec; constant-index operands get a single VMEM buffer."""
    if single_buffer:
        try:
            return pl.BlockSpec(shape, index_map, pipeline_mode=pl.Buffered(1))
        except TypeError:  # pipeline_mode unsupported -> default buffering
            pass
    return pl.BlockSpec(shape, index_map)


def _prenorm_linear_kernel(x_ref, g_ref, b_ref, w_ref, wb_ref, o_ref,
                           xn_ref, acc_ref, *, d_true, tk):
    """grid = (m, n, k): rows x output-tiles x K-tiles.

    x_ref:  (tm, D_pad)   row tile (index (i, 0) -> resident across j, k)
    g/b:    (1, D_pad)    LayerNorm affine
    w_ref:  (tk, tn)      weight K/N tile (index (k, j))
    wb_ref: (1, tn)       linear bias tile
    o_ref:  (tm, tn)      output tile (index (i, j) -> resident across k)
    xn_ref: (tm, D_pad)   cached normalized activations (matmul dtype)
    acc_ref:(tm, tn) f32  matmul accumulator
    """
    j = pl.program_id(1)
    k = pl.program_id(2)
    nk = pl.num_programs(2)

    # --- LayerNorm: compute once per row tile, cache in VMEM -------------
    @pl.when(jnp.logical_and(j == 0, k == 0))
    def _():
        x = x_ref[...].astype(jnp.float32)  # LN stats in f32 (v5e: no bf16 VPU)
        d_padded = x.shape[-1]
        inv_d = jnp.float32(1.0 / d_true)
        mean = jnp.sum(x, axis=-1, keepdims=True) * inv_d
        centered = x - mean
        if d_true != d_padded:
            # Mask padded lanes so the (biased, torch-style) variance is exact.
            lane = jax.lax.broadcasted_iota(jnp.int32, x.shape, dimension=1)
            centered = jnp.where(lane < d_true, centered, 0.0)
        var = jnp.sum(centered * centered, axis=-1, keepdims=True) * inv_d
        xn = centered * jax.lax.rsqrt(var + jnp.float32(LN_EPS))  # rsqrt -> EUP
        xn = xn * g_ref[...].astype(jnp.float32) + b_ref[...].astype(jnp.float32)
        # Padded lanes end up 0 (gamma/beta padding is 0) -> safe for matmul.
        xn_ref[...] = xn.astype(xn_ref.dtype)

    # --- K-tiled matmul with f32 accumulator ------------------------------
    @pl.when(k == 0)
    def _():
        acc_ref[...] = jnp.zeros_like(acc_ref)

    k0 = pl.multiple_of(k * tk, tk)
    xk = xn_ref[:, pl.ds(k0, tk)]
    acc_ref[...] += jnp.dot(xk, w_ref[...], preferred_element_type=jnp.float32)

    @pl.when(k == nk - 1)
    def _():
        y = acc_ref[...] + wb_ref[...].astype(jnp.float32)
        o_ref[...] = y.astype(o_ref.dtype)


@functools.partial(jax.jit, static_argnames=("tm", "tn", "tk", "matmul_dtype"))
def prenorm_forward(x, gamma, beta, w, wb, *, tm=None, tn=None, tk=None,
                    matmul_dtype=None):
    """x: (B, N, D). Returns fn(LayerNorm(x)) with fn = Linear(D, D_out)."""
    B, N, D = x.shape
    d_in_w, D_out = w.shape
    assert d_in_w == D
    M = B * N

    x_it = jnp.dtype(x.dtype).itemsize
    o_it = x_it
    mm_dtype = jnp.dtype(matmul_dtype) if matmul_dtype is not None else jnp.dtype(w.dtype)
    w_it = mm_dtype.itemsize
    mm_it = w_it

    # Sublane granularity for the activation dtype (f32: 8, bf16: 16, int8: 32).
    sub = {4: 8, 2: 16, 1: 32}.get(x_it, 8)

    phys, budget = _vmem_budget()

    D_pad0 = _round_up(D, 128)
    D_out_pad0 = _round_up(D_out, 128)

    # Row tile: 512 on 128-MiB VMEM parts (v5e/v6e), 256 on 64-MiB parts (v7x).
    tm_default = 512 if phys > (96 << 20) else 256
    tm_req = tm if tm is not None else tm_default
    tm_eff = max(sub, _round_up(min(tm_req, _round_up(M, sub)), sub))
    tn_eff = _round_up(min(tn, D_out_pad0), 128) if tn is not None else D_out_pad0
    tk_eff = _round_up(min(tk, D_pad0), 128) if tk is not None else D_pad0
    tm_locked, tn_locked, tk_locked = tm is not None, tn is not None, tk is not None

    def footprint(tm_, tn_, tk_):
        d_pad = _round_up(D_pad0, tk_)
        d_out_pad = _round_up(D_out_pad0, tn_)
        n_g = d_out_pad // tn_
        k_g = d_pad // tk_
        w_bufs = 1 if (n_g == 1 and k_g == 1) else 2
        return (2 * tm_ * d_pad * x_it          # x tile, double-buffered
                + 2 * tm_ * tn_ * o_it          # out tile, double-buffered
                + w_bufs * tk_ * tn_ * w_it     # weight tile
                + tm_ * d_pad * mm_it           # xn cache scratch
                + tm_ * tn_ * 4                 # f32 accumulator scratch
                + 2 * d_pad * 4                 # gamma + beta
                + 2 * tn_ * 4)                  # linear bias

    # Budget-driven shrink: halve the largest unlocked contributor each round.
    for _ in range(64):
        if footprint(tm_eff, tn_eff, tk_eff) <= budget:
            break
        d_pad_cur = _round_up(D_pad0, tk_eff)
        contrib = []
        if not tk_locked and tk_eff > 128:
            contrib.append((2 * tk_eff * tn_eff * w_it, "tk"))
        if not tn_locked and tn_eff > 128:
            contrib.append((tm_eff * tn_eff * (2 * o_it + 4)
                            + 2 * tk_eff * tn_eff * w_it, "tn"))
        if not tm_locked and tm_eff > sub:
            contrib.append((tm_eff * d_pad_cur * (2 * x_it + mm_it), "tm"))
        if not contrib:
            break
        _, which = max(contrib)
        if which == "tk":
            tk_eff = max(128, _round_up(tk_eff // 2, 128))
        elif which == "tn":
            tn_eff = max(128, _round_up(tn_eff // 2, 128))
        else:
            tm_eff = max(sub, _round_up(tm_eff // 2, sub))

    D_pad = _round_up(D_pad0, tk_eff)
    D_out_pad = _round_up(D_out_pad0, tn_eff)
    M_pad = _round_up(M, tm_eff)
    m_grid = M_pad // tm_eff
    n_grid = D_out_pad // tn_eff
    k_grid = D_pad // tk_eff

    # v7x-like parts have 2 TensorCores: make sure the 'parallel' axes have
    # at least 2 steps so both cores get work for small-M inference shapes.
    if (phys <= (64 << 20) and not tm_locked and m_grid * n_grid < 2
            and M_pad >= 2 * sub):
        tm_eff = max(sub, _round_up(tm_eff // 2, sub))
        M_pad = _round_up(M, tm_eff)
        m_grid = M_pad // tm_eff

    x2 = _pad_to(x.reshape(M, D), (M_pad, D_pad))
    g2 = _pad_to(gamma.reshape(1, D), (1, D_pad))
    b2 = _pad_to(beta.reshape(1, D), (1, D_pad))
    w_cast = w.astype(mm_dtype) if matmul_dtype is not None else w
    w2 = _pad_to(w_cast, (D_pad, D_out_pad))
    wb2 = _pad_to(wb.reshape(1, D_out), (1, D_out_pad))

    # VMEM limit from the actual footprint, capped below physical VMEM so
    # Mosaic internal scratch always has headroom (critical on v7x's 64 MiB).
    fp = footprint(tm_eff, tn_eff, tk_eff)
    vmem_limit = int(min(int(phys * 0.85), max(fp + (16 << 20), 32 << 20)))

    w_streams = 1 if (n_grid == 1 and k_grid == 1) else m_grid
    cost = pl.CostEstimate(
        flops=2 * M_pad * D_pad * D_out_pad,
        transcendentals=M_pad,
        bytes_accessed=int(M_pad * D_pad * x_it
                           + w_streams * D_pad * D_out_pad * w_it
                           + M_pad * D_out_pad * o_it),
    )

    kernel = functools.partial(_prenorm_linear_kernel, d_true=D, tk=tk_eff)

    out = pl.pallas_call(
        kernel,
        out_shape=jax.ShapeDtypeStruct((M_pad, D_out_pad), x.dtype),
        grid=(m_grid, n_grid, k_grid),
        in_specs=[
            pl.BlockSpec((tm_eff, D_pad), lambda i, j, k: (i, 0)),              # x rows
            _spec((1, D_pad), lambda i, j, k: (0, 0), True),                    # gamma
            _spec((1, D_pad), lambda i, j, k: (0, 0), True),                    # beta
            _spec((tk_eff, tn_eff), lambda i, j, k: (k, j),
                  n_grid == 1 and k_grid == 1),                                 # weight
            _spec((1, tn_eff), lambda i, j, k: (0, j), n_grid == 1),            # bias
        ],
        out_specs=pl.BlockSpec((tm_eff, tn_eff), lambda i, j, k: (i, j)),
        scratch_shapes=[
            pltpu.VMEM((tm_eff, D_pad), mm_dtype),       # cached normalized x
            pltpu.VMEM((tm_eff, tn_eff), jnp.float32),   # matmul accumulator
        ],
        compiler_params=pltpu.CompilerParams(
            dimension_semantics=("parallel", "parallel", "arbitrary"),
            vmem_limit_bytes=vmem_limit,
        ),
        cost_estimate=cost,
    )(x2, g2, b2, w2, wb2)

    return out[:M, :D_out].reshape(B, N, D_out)


def prenorm_reference(x, gamma, beta, w, wb):
    xf = x.astype(jnp.float32)
    mean = jnp.mean(xf, axis=-1, keepdims=True)
    var = jnp.mean((xf - mean) ** 2, axis=-1, keepdims=True)
    xn = (xf - mean) / jnp.sqrt(var + LN_EPS)
    xn = xn * gamma.astype(jnp.float32) + beta.astype(jnp.float32)
    y = xn @ w.astype(jnp.float32) + wb.astype(jnp.float32)
    return y.astype(x.dtype)


def _make_inputs(key, B, N, D, D_out, dtype):
    k_x, k_w, k_wb, k_g, k_b = jax.random.split(key, 5)
    x = jax.random.normal(k_x, (B, N, D), dtype=jnp.float32)
    gamma = jnp.ones((D,), jnp.float32) + 0.1 * jax.random.normal(k_g, (D,))
    beta = 0.1 * jax.random.normal(k_b, (D,))
    w = jax.random.normal(k_w, (D, D_out), dtype=jnp.float32) / jnp.sqrt(D)
    wb = 0.01 * jax.random.normal(k_wb, (D_out,), dtype=jnp.float32)
    return tuple(a.astype(dtype) for a in (x, gamma, beta, w, wb))


if __name__ == "__main__":
    key = jax.random.PRNGKey(0)
    k1, k2 = jax.random.split(key, 2)

    # --- Case 1: small shapes, single-tile path (f32) ---------------------
    B, N, D = 2, 8, 32
    x, g, b, w, wb = _make_inputs(k1, B, N, D, D, jnp.float32)
    out32 = jax.block_until_ready(prenorm_forward(x, g, b, w, wb))
    ref32 = prenorm_reference(x, g, b, w, wb)
    assert out32.shape == (B, N, D)
    assert jnp.allclose(out32, ref32, atol=2e-4, rtol=1e-4), "f32 mismatch"

    # --- Case 2: forced m/n/k tiling (LN cache + accumulator + masking) ---
    B2, N2, D2, DO2 = 2, 72, 192, 160
    x2, g2_, b2_, w2_, wb2_ = _make_inputs(k2, B2, N2, D2, DO2, jnp.float32)
    out_t = jax.block_until_ready(
        prenorm_forward(x2, g2_, b2_, w2_, wb2_, tm=64, tn=128, tk=128))
    ref_t = prenorm_reference(x2, g2_, b2_, w2_, wb2_)
    assert out_t.shape == (B2, N2, DO2)
    assert jnp.allclose(out_t, ref_t, atol=5e-4, rtol=5e-4), "tiled mismatch"

    # --- Case 3: bf16 inputs (native bf16 MXU path) -----------------------
    xb, gb, bb, wbm, wbb = (a.astype(jnp.bfloat16) for a in (x, g, b, w, wb))
    outb = jax.block_until_ready(prenorm_forward(xb, gb, bb, wbm, wbb))
    refb = prenorm_reference(xb, gb, bb, wbm, wbb)
    assert outb.shape == (B, N, D)
    assert jnp.allclose(outb.astype(jnp.float32), refb.astype(jnp.float32),
                        atol=1e-1, rtol=1e-1), "bf16 mismatch"

    # --- Case 4: opt-in bf16 matmul for f32 inputs -------------------------
    outm = jax.block_until_ready(
        prenorm_forward(x, g, b, w, wb, matmul_dtype=jnp.bfloat16))
    assert outm.shape == (B, N, D)
    assert jnp.allclose(outm, ref32, atol=1e-1, rtol=1e-1), "bf16-mm mismatch"

    print("KERNEL_OK")
</pallas_src>

<mosaic_0001>
module attributes {stable_mosaic.version = 11 : i64} {
  func.func @_prenorm_linear_kernel(%arg0: i32, %arg1: i32, %arg2: i32, %arg3: memref<8x128xf32, #tpu.memory_space<vmem>>, %arg4: memref<1x128xf32, #tpu.memory_space<vmem>>, %arg5: memref<1x128xf32, #tpu.memory_space<vmem>>, %arg6: memref<128x128xf32, #tpu.memory_space<vmem>>, %arg7: memref<1x128xf32, #tpu.memory_space<vmem>>, %arg8: memref<8x128xf32, #tpu.memory_space<vmem>>, %arg9: memref<8x128xf32, #tpu.memory_space<vmem>>, %arg10: memref<8x128xf32, #tpu.memory_space<vmem>>) attributes {dimension_semantics = [#tpu.dimension_semantics<parallel>, #tpu.dimension_semantics<parallel>, #tpu.dimension_semantics<arbitrary>], iteration_bounds = array<i64: 2, 1, 1>, scalar_prefetch = 0 : i64, scratch_operands = 2 : i64, tpu.core_type = #tpu.core_type<tc>, window_params = [{transform_indices = @transform_0, window_bounds = array<i64: 8, 128>}, {pipeline_mode = #tpu.pipeline_mode<synchronous>, transform_indices = @transform_1, window_bounds = array<i64: 1, 128>}, {pipeline_mode = #tpu.pipeline_mode<synchronous>, transform_indices = @transform_2, window_bounds = array<i64: 1, 128>}, {pipeline_mode = #tpu.pipeline_mode<synchronous>, transform_indices = @transform_3, window_bounds = array<i64: 128, 128>}, {pipeline_mode = #tpu.pipeline_mode<synchronous>, transform_indices = @transform_4, window_bounds = array<i64: 1, 128>}, {transform_indices = @transform_5, window_bounds = array<i64: 8, 128>}]} {
    %c0_i32 = arith.constant 0 : i32
    %0 = arith.cmpi eq, %arg1, %c0_i32 : i32
    %c0_i32_0 = arith.constant 0 : i32
    %1 = arith.cmpi eq, %arg2, %c0_i32_0 : i32
    %2 = arith.andi %0, %1 : i1
    %3 = arith.extui %2 : i1 to i32
    %c0_i32_1 = arith.constant 0 : i32
    %4 = arith.cmpi ne, %3, %c0_i32_1 : i32
    scf.if %4 {
      %c0_12 = arith.constant 0 : index
      %c0_13 = arith.constant 0 : index
      %20 = vector.load %arg3[%c0_12, %c0_13] : memref<8x128xf32, #tpu.memory_space<vmem>>, vector<8x128xf32>
      %cst_14 = arith.constant dense<0.000000e+00> : vector<8xf32>
      %21 = vector.multi_reduction <add>, %20, %cst_14 [1] : vector<8x128xf32> to vector<8xf32>
      %22 = vector.shape_cast %21 : vector<8xf32> to vector<8x1xf32>
      %cst_15 = arith.constant 3.125000e-02 : f32
      %23 = vector.broadcast %cst_15 : f32 to vector<8x1xf32>
      %24 = arith.mulf %22, %23 : vector<8x1xf32>
      %25 = vector.broadcast %24 : vector<8x1xf32> to vector<8x128xf32>
      %26 = arith.subf %20, %25 : vector<8x128xf32>
      %27 = tpu.iota {dimensions = array<i32: 1>} : vector<8x128xi32>
      %c32_i32 = arith.constant 32 : i32
      %28 = vector.broadcast %c32_i32 : i32 to vector<8x128xi32>
      %29 = arith.cmpi slt, %27, %28 : vector<8x128xi32>
      %cst_16 = arith.constant 0.000000e+00 : f32
      %30 = vector.broadcast %cst_16 : f32 to vector<8x128xf32>
      %31 = arith.select %29, %26, %30 : vector<8x128xi1>, vector<8x128xf32>
      %32 = arith.mulf %31, %31 : vector<8x128xf32>
      %cst_17 = arith.constant dense<0.000000e+00> : vector<8xf32>
      %33 = vector.multi_reduction <add>, %32, %cst_17 [1] : vector<8x128xf32> to vector<8xf32>
      %34 = vector.shape_cast %33 : vector<8xf32> to vector<8x1xf32>
      %cst_18 = arith.constant 3.125000e-02 : f32
      %35 = vector.broadcast %cst_18 : f32 to vector<8x1xf32>
      %36 = arith.mulf %34, %35 : vector<8x1xf32>
      %cst_19 = arith.constant 9.99999974E-6 : f32
      %37 = vector.broadcast %cst_19 : f32 to vector<8x1xf32>
      %38 = arith.addf %36, %37 : vector<8x1xf32>
      %39 = math.rsqrt %38 : vector<8x1xf32>
      %40 = vector.broadcast %39 : vector<8x1xf32> to vector<8x128xf32>
      %41 = arith.mulf %31, %40 : vector<8x128xf32>
      %c0_20 = arith.constant 0 : index
      %c0_21 = arith.constant 0 : index
      %42 = vector.load %arg4[%c0_20, %c0_21] : memref<1x128xf32, #tpu.memory_space<vmem>>, vector<1x128xf32>
      %43 = vector.broadcast %42 : vector<1x128xf32> to vector<8x128xf32>
      %44 = arith.mulf %41, %43 : vector<8x128xf32>
      %c0_22 = arith.constant 0 : index
      %c0_23 = arith.constant 0 : index
      %45 = vector.load %arg5[%c0_22, %c0_23] : memref<1x128xf32, #tpu.memory_space<vmem>>, vector<1x128xf32>
      %46 = vector.broadcast %45 : vector<1x128xf32> to vector<8x128xf32>
      %47 = arith.addf %44, %46 : vector<8x128xf32>
      %c0_24 = arith.constant 0 : index
      %c0_25 = arith.constant 0 : index
      %48 = vector.load %arg9[%c0_24, %c0_25] : memref<8x128xf32, #tpu.memory_space<vmem>>, vector<8x128xf32>
      tpu.vector_store %arg9[%c0_24, %c0_25], %47 {strides = array<i32>} : memref<8x128xf32, #tpu.memory_space<vmem>>, vector<8x128xf32>,
    } else {
    }
    %c0_i32_2 = arith.constant 0 : i32
    %5 = arith.cmpi eq, %arg2, %c0_i32_2 : i32
    %6 = arith.extui %5 : i1 to i32
    %c0_i32_3 = arith.constant 0 : i32
    %7 = arith.cmpi ne, %6, %c0_i32_3 : i32
    scf.if %7 {
      %cst_12 = arith.constant 0.000000e+00 : f32
      %20 = vector.broadcast %cst_12 : f32 to vector<8x128xf32>
      %c0_13 = arith.constant 0 : index
      %c0_14 = arith.constant 0 : index
      %21 = vector.load %arg10[%c0_13, %c0_14] : memref<8x128xf32, #tpu.memory_space<vmem>>, vector<8x128xf32>
      tpu.vector_store %arg10[%c0_13, %c0_14], %20 {strides = array<i32>} : memref<8x128xf32, #tpu.memory_space<vmem>>, vector<8x128xf32>,
    } else {
    }
    %c128_i32 = arith.constant 128 : i32
    %8 = arith.muli %arg2, %c128_i32 : i32
    %9 = tpu.assume_multiple %8, 128 : i32
    %c0 = arith.constant 0 : index
    %10 = arith.index_cast %9 : i32 to index
    %11 = vector.load %arg9[%c0, %10] : memref<8x128xf32, #tpu.memory_space<vmem>>, vector<8x128xf32>
    %c0_4 = arith.constant 0 : index
    %c0_5 = arith.constant 0 : index
    %12 = vector.load %arg10[%c0_4, %c0_5] : memref<8x128xf32, #tpu.memory_space<vmem>>, vector<8x128xf32>
    %c0_6 = arith.constant 0 : index
    %c0_7 = arith.constant 0 : index
    %13 = vector.load %arg6[%c0_6, %c0_7] : memref<128x128xf32, #tpu.memory_space<vmem>>, vector<128x128xf32>
    %cst = arith.constant dense<0.000000e+00> : vector<8x128xf32>
    %14 = tpu.matmul %11, %13, %cst {dimension_numbers = #tpu.dot_dimension_numbers<[1], [0], [0], [1], [0, 0, 1, 1], [], []>} : vector<8x128xf32>, vector<128x128xf32>, vector<8x128xf32> -> vector<8x128xf32>
    %15 = arith.addf %12, %14 : vector<8x128xf32>
    %c0_8 = arith.constant 0 : index
    %c0_9 = arith.constant 0 : index
    %16 = vector.load %arg10[%c0_8, %c0_9] : memref<8x128xf32, #tpu.memory_space<vmem>>, vector<8x128xf32>
    tpu.vector_store %arg10[%c0_8, %c0_9], %15 {strides = array<i32>} : memref<8x128xf32, #tpu.memory_space<vmem>>, vector<8x128xf32>,
    %c0_i32_10 = arith.constant 0 : i32
    %17 = arith.cmpi eq, %arg2, %c0_i32_10 : i32
    %18 = arith.extui %17 : i1 to i32
    %c0_i32_11 = arith.constant 0 : i32
    %19 = arith.cmpi ne, %18, %c0_i32_11 : i32
    scf.if %19 {
      %c0_12 = arith.constant 0 : index
      %c0_13 = arith.constant 0 : index
      %20 = vector.load %arg10[%c0_12, %c0_13] : memref<8x128xf32, #tpu.memory_space<vmem>>, vector<8x128xf32>
      %c0_14 = arith.constant 0 : index
      %c0_15 = arith.constant 0 : index
      %21 = vector.load %arg7[%c0_14, %c0_15] : memref<1x128xf32, #tpu.memory_space<vmem>>, vector<1x128xf32>
      %22 = vector.broadcast %21 : vector<1x128xf32> to vector<8x128xf32>
      %23 = arith.addf %20, %22 : vector<8x128xf32>
      %c0_16 = arith.constant 0 : index
      %c0_17 = arith.constant 0 : index
      %24 = vector.load %arg8[%c0_16, %c0_17] : memref<8x128xf32, #tpu.memory_space<vmem>>, vector<8x128xf32>
      tpu.vector_store %arg8[%c0_16, %c0_17], %23 {strides = array<i32>} : memref<8x128xf32, #tpu.memory_space<vmem>>, vector<8x128xf32>,
    } else {
    }
    return
  }
  func.func @transform_0(%arg0: i32, %arg1: i32, %arg2: i32) -> (i32, i32) {
    %c0_i32 = arith.constant 0 : i32
    %c0_i32_0 = arith.constant 0 : i32
    return %arg0, %c0_i32 : i32, i32
  }
  func.func @transform_1(%arg0: i32, %arg1: i32, %arg2: i32) -> (i32, i32) {
    %c0_i32 = arith.constant 0 : i32
    %c0_i32_0 = arith.constant 0 : i32
    %c0_i32_1 = arith.constant 0 : i32
    return %c0_i32, %c0_i32_0 : i32, i32
  }
  func.func @transform_2(%arg0: i32, %arg1: i32, %arg2: i32) -> (i32, i32) {
    %c0_i32 = arith.constant 0 : i32
    %c0_i32_0 = arith.constant 0 : i32
    %c0_i32_1 = arith.constant 0 : i32
    return %c0_i32, %c0_i32_0 : i32, i32
  }
  func.func @transform_3(%arg0: i32, %arg1: i32, %arg2: i32) -> (i32, i32) {
    %c0_i32 = arith.constant 0 : i32
    return %arg2, %arg1 : i32, i32
  }
  func.func @transform_4(%arg0: i32, %arg1: i32, %arg2: i32) -> (i32, i32) {
    %c0_i32 = arith.constant 0 : i32
    %c0_i32_0 = arith.constant 0 : i32
    return %c0_i32, %arg1 : i32, i32
  }
  func.func @transform_5(%arg0: i32, %arg1: i32, %arg2: i32) -> (i32, i32) {
    %c0_i32 = arith.constant 0 : i32
    return %arg0, %arg1 : i32, i32
  }
}

</mosaic_0001>

<bundles_post_ra>
// kernel: prenorm_forward.1
= control target key start
LH: loop header
LB: loop body
LE: loop exit
PB: predicated region body
PF: predicated region fallthrough
CT: control target
= control target key end

     0   :  { %s726_s18 = smov 0   ;;  %s728_s19 = smov 0   ;;  %s823_s0 = inlined_call_operand.vmem [shape: f32[16,128], index: 0, kind: input, shape index: {}]   ;;  %s824_s1 = inlined_call_operand.vmem [shape: f32[1,128], index: 1, kind: input, shape index: {}]   ;;  %s825_s2 = inlined_call_operand.vmem [shape: f32[1,128], index: 2, kind: input, shape index: {}]   ;;  %s826_s3 = inlined_call_operand.vmem [shape: f32[128,128], index: 3, kind: input, shape index: {}]   ;;  %s827_s4 = inlined_call_operand.vmem [shape: f32[1,128], index: 4, kind: input, shape index: {}]   ;;  %s828_s5 = inlined_call_operand.vmem [shape: f32[16,128], index: 5, kind: output, shape index: {}]  }
   0x1   :  { %s730_s20 = smov 0  }
   0x2 LB: > { %s34_s21 = sadd.s32 1, %s687_s19  ;;  %p556_p0 = scmp.ge.s32.totalorder %s691_s20, 1  ;;  %s691_s20 = sphi %s730_s20, %s15_s20   ;;  %s687_s19 = sphi %s728_s19, %s830_s19   ;;  %s683_s18 = sphi %s726_s18, %s829_s18  }
   0x3   : > { %p36_p1 = scmp.ge.s32.totalorder %s34_s21, 2  ;;  %p231_p2 = scmp.lt.s32.totalorder %s691_s20, 3 }
   0x5   : > { %s832_s21 = smov (%p36_p1, %s34_s21), 0  ;;  %p232_p3 = pnand %p556_p0, %p231_p2 }
   0x6   : > { %p271_p4 = scmp.lt.s32.totalorder (!%p232_p3), %s683_s18, 1  ;;  %v343_v1 = vld [vmem:[%s826_s3] sm:$0xff] (!%p232_p3)  ;;  %v344_v2 = vld [vmem:[%s826_s3 + $0x8] sm:$0xff] (!%p232_p3)  ;;  %v345_v3 = vld [vmem:[%s826_s3 + $0x10] sm:$0xff] (!%p232_p3)  ;;  %v693_v4 = vmov (!%p232_p3), 0.0|0.0   ;;  %v305_v11 = vlaneseq (!%p232_p3)  ;;  %vm694_vm1 = vmmov (!%p232_p3), 0  }
   0x7   : > { %235 = sbr.rel (%p232_p3) target bundleno = 545 (0x221), region = 40  ;;  %616 = vmatprep.subr.bf16.mxu0 (!%p232_p3), %v693_v4  ;;  %v617_v5 = vpack.c.bf16 (!%p232_p3), %v344_v2, %v343_v1  ;;  %v346_v6 = vld [vmem:[%s826_s3 + $0x18] sm:$0xff] (!%p232_p3)  ;;  %v347_v8 = vld [vmem:[%s826_s3 + $0x20] sm:$0xff] (!%p232_p3)  ;;  %v348_v9 = vld [vmem:[%s826_s3 + $0x28] sm:$0xff] (!%p232_p3)  ;;  %v695_v26 = vmov (!%p232_p3), 0.0  }
   0x8   : > { %v620_v7 = vpack.c.bf16 (!%p232_p3), %v346_v6, %v345_v3  ;;  %v623_v10 = vpack.c.bf16 (!%p232_p3), %v348_v9, %v347_v8  ;;  %v306_v12 = vand.u32 (!%p232_p3), 127, %v305_v11  ;;  %v349_v18 = vld [vmem:[%s826_s3 + $0x30] sm:$0xff] (!%p232_p3)  ;;  %v350_v19 = vld [vmem:[%s826_s3 + $0x38] sm:$0xff] (!%p232_p3)  ;;  %v351_v21 = vld [vmem:[%s826_s3 + $0x40] sm:$0xff] (!%p232_p3)  ;;  %613 = vmatprep.mubr.msk.f32.mxu0 (!%p232_p3), %vm694_vm1, %v695_v26 }
   0x9   : > { %618 = vmatpush3.bf16.msra.mxu0 (!%p232_p3), %v617_v5  ;;  %v626_v20 = vpack.c.bf16 (!%p232_p3), %v350_v19, %v349_v18  ;;  %v352_v22 = vld [vmem:[%s826_s3 + $0x48] sm:$0xff] (!%p232_p3)  ;;  %v353_v24 = vld [vmem:[%s826_s3 + $0x50] sm:$0xff] (!%p232_p3)  ;;  %v354_v25 = vld [vmem:[%s826_s3 + $0x58] sm:$0xff] (!%p232_p3) }
   0xa   : > { %619 = vmatprep.subr.bf16.mxu0 (!%p232_p3), %v693_v4  ;;  %vm307_vm0 = vcmp.lt.s32.totalorder (!%p232_p3), %v306_v12, 32  ;;  %v629_v23 = vpack.c.bf16 (!%p232_p3), %v352_v22, %v351_v21  ;;  %v632_v27 = vpack.c.bf16 (!%p232_p3), %v354_v25, %v353_v24  ;;  %v355_v28 = vld [vmem:[%s826_s3 + $0x60] sm:$0xff] (!%p232_p3)  ;;  %v356_v29 = vld [vmem:[%s826_s3 + $0x68] sm:$0xff] (!%p232_p3)  ;;  %v357_v31 = vld [vmem:[%s826_s3 + $0x70] sm:$0xff] (!%p232_p3) }
   0xb   : > { %v635_v30 = vpack.c.bf16 (!%p232_p3), %v356_v29, %v355_v28  ;;  %v358_v32 = vld [vmem:[%s826_s3 + $0x78] sm:$0xff] (!%p232_p3)  ;;  %v559_v38 = vld [vmem:[%s824_s1] ss:$0 sm:$0xff] (!%p232_p3) }
   0xc   : > { %v638_v33 = vpack.c.bf16 (!%p232_p3), %v358_v32, %v357_v31  ;;  %v560_v40 = vld [vmem:[%s825_s2] ss:$0 sm:$0xff] (!%p232_p3) }
   0xd   : > { %621 = vmatpush3.bf16.msra.mxu0 (!%p232_p3), %v620_v7  ;;  %v561_v43 = vld [vmem:[%s827_s4] ss:$0 sm:$0xff] (!%p232_p3) }
   0xe   : > { %s834_s18 = smov (!%p271_p4, %s683_s18), 1  ;;  %622 = vmatprep.subr.bf16.mxu0 %v693_v4 }
   0xf   : > { %s557_s22 = sshll.u32 %s834_s18, 3 }
  0x10   : > { %s274_s25 = scalar_lea.vmem %s823_s0, %s557_s22  ;;  %s293_s26 = scalar_lea.vmem %s828_s5, %s557_s22 }
  0x11   : > { %v300_v0 = vld [vmem:[%s274_s25] sm:$0xff]  ;;  %624 = vmatpush3.bf16.msra.mxu0 %v623_v10 }
  0x12   : > { %301 = vadd.xlane.f32.xlu0 %v300_v0  ;;  %625 = vmatprep.subr.bf16.mxu0 %v693_v4 }
  0x15   : > { %627 = vmatpush3.bf16.msra.mxu0 %v626_v20 }
  0x16   : > { %628 = vmatprep.subr.bf16.mxu0 %v693_v4 }
  0x19   : > { %630 = vmatpush3.bf16.msra.mxu0 %v629_v23 }
  0x1a   : > { %631 = vmatprep.subr.bf16.mxu0 %v693_v4 }
  0x1d   : > { %633 = vmatpush3.bf16.msra.mxu0 %v632_v27 }
  0x1e   : > { %634 = vmatprep.subr.bf16.mxu0 %v693_v4 }
  0x21   : > { %636 = vmatpush3.bf16.msra.mxu0 %v635_v30 }
  0x22   : > { %637 = vmatprep.subr.bf16.mxu0 %v693_v4 }
  0x25   : > { %639 = vmatpush3.bf16.msra.mxu0 %v638_v33 }
  0x9f   : > { %v302_v13 = vpop.xlane.xlu0 %301 }
  0xa0   : > { %v303_v14 = vmul.f32 0.03125, %v302_v13 }
  0xa2   : > { %v304_v15 = vsub.f32 %v300_v0, %v303_v14 }
  0xa4   : > { %v308_v16 = vsel %vm307_vm0, %v304_v15, 0.0 }
  0xa5   : > { %v309_v17 = vmul.f32 %v308_v16, %v308_v16 }
  0xa7   : > { %310 = vadd.xlane.f32.xlu0 %v309_v17 }
 0x134   : > { %v311_v34 = vpop.xlane.xlu0 %310 }
 0x135   : > { %v312_v35 = vmul.f32 0.03125, %v311_v34 }
 0x137   : > { %v313_v36 = vadd.f32 1e-05, %v312_v35 }
 0x139   : > { %667 = vrsqrt.f32 %v313_v36 }
 0x143   : > { %v668_v37 = vpop.eup %667 }
 0x144   : > { %v315_v39 = vmul.f32 %v668_v37, %v308_v16 }
 0x146   : > { %v323_v41 = vmul.f32 %v559_v38, %v315_v39 }
 0x148   : > { %v331_v42 = vadd.f32 %v560_v40, %v323_v41 }
 0x14a   : > { %614 = vmatmul.mubr.f32.vlgmr.msra.gmra.mrb[0].mxu0 %v331_v42 }
 0x21d   : > { %v425_v44 = vpop.f32.mrb[0].mxu0 }
 0x21e   : > { %v442_v45 = vadd.f32 %v561_v43, %v425_v44  ;;  %v615_v46 = vpop.f32.mrb[1].mxu0 }
 0x220   : > { %443 = vst [vmem:[%s293_s26] sm:$0xff] %v442_v45 }
 0x221 PF: > { %s15_s20 = sadd.s32 1, %s691_s20   ;;  %s829_s18 = smov %s687_s19 }
 0x222   : > { %p12_p5 = scmp.ge.s32.totalorder %s15_s20, 4   ;;  %s830_s19 = smov %s832_s21 }
 0x224   :  { %14 = sbr.rel (!%p12_p5) target bundleno = 2 (0x2), region = 89 }

</bundles_post_ra>
